<compile_context>
chip_gen: v5e
topology: v5e:2x2
jax: 0.10.0
libtpu: 0.0.40
codegen_flags: <defaults>
</compile_context>

<pallas_src>
import functools

import jax
import jax.numpy as jnp
from jax.experimental import pallas as pl
from jax.experimental.pallas import tpu as pltpu


def _cdiv(a, b):
    return (a + b - 1) // b


def _round_up(n, m):
    return ((n + m - 1) // m) * m


def _cross_kernel(x_ref, w_ref, b_ref, o_ref, *, layer_num):
    """Row-major: batch on sublanes, D on lanes.  One batch tile per step."""
    x0 = x_ref[...].astype(jnp.float32)                      # (TB, D)
    x = x0
    for i in range(layer_num):                               # L small: unroll
        w = w_ref[i, :].astype(jnp.float32)                  # (D,)
        b = b_ref[i, :].astype(jnp.float32)                  # (D,)
        # s[r] = x_i[r, :] . w_i   == the (x0 @ x_i^T) @ w_i contraction
        s = jnp.sum(x * w[None, :], axis=-1, keepdims=True)  # (TB, 1)
        x = x0 * s + b[None, :] + x
    o_ref[...] = x.astype(o_ref.dtype)


def cross_dcn(x, weights, biases):
    """x: (B, D); weights/biases: (L, D). Returns (B, D), dtype of x."""
    B, D = x.shape
    L, _ = weights.shape
    itemsize = jnp.dtype(x.dtype).itemsize
    p_itemsize = jnp.dtype(weights.dtype).itemsize

    # Sublane packing: 8 rows/vreg for f32, 16 for bf16, 32 for int8/fp8.
    sub = max(8, 32 // max(1, itemsize))

    # ~2 MiB per x block (same for out block) -> ~8 MiB double-buffered,
    # inside every generation's default scoped VMEM; amortizes per-step cost.
    target_bytes = 2 << 20
    tb = max(sub, (target_bytes // max(1, D * itemsize)) // sub * sub)
    # Guarantee >=2 batch blocks when B allows it (megacore on v7x).
    tb = min(tb, _round_up(_cdiv(B, 2), sub))
    tb = max(sub, tb)
    grid = (_cdiv(B, tb),)

    cost = pl.CostEstimate(
        flops=6 * L * B * D,
        transcendentals=0,
        bytes_accessed=2 * B * D * itemsize + 2 * L * D * p_itemsize,
    )

    kernel = functools.partial(_cross_kernel, layer_num=L)
    return pl.pallas_call(
        kernel,
        out_shape=jax.ShapeDtypeStruct((B, D), x.dtype),
        grid=grid,
        in_specs=[
            pl.BlockSpec((tb, D), lambda i: (i, 0)),          # x batch tile
            pl.BlockSpec((L, D), lambda i: (0, 0)),           # VMEM-resident w
            pl.BlockSpec((L, D), lambda i: (0, 0)),           # VMEM-resident b
        ],
        out_specs=pl.BlockSpec((tb, D), lambda i: (i, 0)),
        compiler_params=pltpu.CompilerParams(
            dimension_semantics=("parallel",)),
        cost_estimate=cost,
    )(x, weights, biases)


def cross_dcn_reference(x, weights, biases):
    """Plain-JAX mirror of the PyTorch forward (for verification)."""
    x0 = x[:, :, None].astype(jnp.float32)                   # (B, D, 1)
    xc = x0
    xi = x0
    for i in range(weights.shape[0]):
        xT = jnp.transpose(xi, (0, 2, 1))                     # (B, 1, D)
        m = jnp.matmul(xc, xT)                                # (B, D, D)
        xi = (jnp.matmul(m, weights[i][:, None].astype(jnp.float32))
              + biases[i][:, None].astype(jnp.float32) + xi)
    return jnp.squeeze(xi, axis=2)


if __name__ == "__main__":
    key = jax.random.PRNGKey(0)

    # Case 1: small D (< 128), single batch block.
    B, D, L = 8, 32, 3
    kx, kw, kb, key = jax.random.split(key, 4)
    x = jax.random.normal(kx, (B, D), dtype=jnp.float32)
    weights = jax.random.uniform(kw, (L, D), dtype=jnp.float32)  # torch.rand
    biases = jax.random.uniform(kb, (L, D), dtype=jnp.float32)

    out = jax.block_until_ready(cross_dcn(x, weights, biases))
    ref = cross_dcn_reference(x, weights, biases)
    assert out.shape == (B, D)
    assert jnp.allclose(out, ref, rtol=1e-4, atol=1e-4), "mismatch (D<128)"

    # Case 2: D >= 128 with a ragged batch (tests the cdiv-grid tail block).
    B2, D2, L2 = 20, 128, 2
    kx, kw, kb, key = jax.random.split(key, 4)
    x2 = jax.random.normal(kx, (B2, D2), dtype=jnp.float32)
    w2 = jax.random.uniform(kw, (L2, D2), dtype=jnp.float32)
    b2 = jax.random.uniform(kb, (L2, D2), dtype=jnp.float32)

    out2 = jax.block_until_ready(cross_dcn(x2, w2, b2))
    ref2 = cross_dcn_reference(x2, w2, b2)
    assert out2.shape == (B2, D2)
    assert jnp.allclose(out2, ref2, rtol=1e-4, atol=1e-4), "mismatch (tail)"

    # Case 3: bf16 I/O (halved HBM traffic); compute is still f32 in-kernel,
    # so only the final store rounds -> loose tolerance vs f32 reference.
    B3, D3, L3 = 16, 32, 2
    kx, kw, kb, key = jax.random.split(key, 4)
    x3 = jax.random.normal(kx, (B3, D3), dtype=jnp.float32).astype(jnp.bfloat16)
    w3 = jax.random.uniform(kw, (L3, D3), dtype=jnp.float32).astype(jnp.bfloat16)
    b3 = jax.random.uniform(kb, (L3, D3), dtype=jnp.float32).astype(jnp.bfloat16)

    out3 = jax.block_until_ready(cross_dcn(x3, w3, b3))
    ref3 = cross_dcn_reference(x3, w3, b3)
    assert out3.shape == (B3, D3) and out3.dtype == jnp.bfloat16
    assert jnp.allclose(out3.astype(jnp.float32), ref3, rtol=2e-2, atol=2e-2), \
        "mismatch (bf16)"

    print("KERNEL_OK")
</pallas_src>

<mosaic_0001>
module attributes {stable_mosaic.version = 11 : i64} {
  func.func @_cross_kernel(%arg0: i32, %arg1: memref<8x32xf32, #tpu.memory_space<vmem>>, %arg2: memref<3x32xf32, #tpu.memory_space<vmem>>, %arg3: memref<3x32xf32, #tpu.memory_space<vmem>>, %arg4: memref<8x32xf32, #tpu.memory_space<vmem>>) attributes {dimension_semantics = [#tpu.dimension_semantics<parallel>], iteration_bounds = array<i64: 1>, scalar_prefetch = 0 : i64, scratch_operands = 0 : i64, tpu.core_type = #tpu.core_type<tc>, window_params = [{transform_indices = @transform_0, window_bounds = array<i64: 8, 32>}, {pipeline_mode = #tpu.pipeline_mode<synchronous>, transform_indices = @transform_1, window_bounds = array<i64: 3, 32>}, {pipeline_mode = #tpu.pipeline_mode<synchronous>, transform_indices = @transform_2, window_bounds = array<i64: 3, 32>}, {transform_indices = @transform_3, window_bounds = array<i64: 8, 32>}]} {
    %c0 = arith.constant 0 : index
    %c0_0 = arith.constant 0 : index
    %0 = vector.load %arg1[%c0, %c0_0] : memref<8x32xf32, #tpu.memory_space<vmem>>, vector<8x32xf32>
    %c0_1 = arith.constant 0 : index
    %c0_2 = arith.constant 0 : index
    %1 = vector.load %arg2[%c0_1, %c0_2] : memref<3x32xf32, #tpu.memory_space<vmem>>, vector<1x32xf32>
    %2 = vector.shape_cast %1 : vector<1x32xf32> to vector<32xf32>
    %c0_3 = arith.constant 0 : index
    %c0_4 = arith.constant 0 : index
    %3 = vector.load %arg3[%c0_3, %c0_4] : memref<3x32xf32, #tpu.memory_space<vmem>>, vector<1x32xf32>
    %4 = vector.shape_cast %3 : vector<1x32xf32> to vector<32xf32>
    %5 = vector.shape_cast %2 : vector<32xf32> to vector<1x32xf32>
    %6 = vector.broadcast %5 : vector<1x32xf32> to vector<8x32xf32>
    %7 = arith.mulf %0, %6 : vector<8x32xf32>
    %cst = arith.constant dense<0.000000e+00> : vector<8xf32>
    %8 = vector.multi_reduction <add>, %7, %cst [1] : vector<8x32xf32> to vector<8xf32>
    %9 = vector.shape_cast %8 : vector<8xf32> to vector<8x1xf32>
    %10 = vector.broadcast %9 : vector<8x1xf32> to vector<8x32xf32>
    %11 = arith.mulf %0, %10 : vector<8x32xf32>
    %12 = vector.shape_cast %4 : vector<32xf32> to vector<1x32xf32>
    %13 = vector.broadcast %12 : vector<1x32xf32> to vector<8x32xf32>
    %14 = arith.addf %11, %13 : vector<8x32xf32>
    %15 = arith.addf %14, %0 : vector<8x32xf32>
    %c1 = arith.constant 1 : index
    %c0_5 = arith.constant 0 : index
    %16 = vector.load %arg2[%c1, %c0_5] : memref<3x32xf32, #tpu.memory_space<vmem>>, vector<1x32xf32>
    %17 = vector.shape_cast %16 : vector<1x32xf32> to vector<32xf32>
    %c1_6 = arith.constant 1 : index
    %c0_7 = arith.constant 0 : index
    %18 = vector.load %arg3[%c1_6, %c0_7] : memref<3x32xf32, #tpu.memory_space<vmem>>, vector<1x32xf32>
    %19 = vector.shape_cast %18 : vector<1x32xf32> to vector<32xf32>
    %20 = vector.shape_cast %17 : vector<32xf32> to vector<1x32xf32>
    %21 = vector.broadcast %20 : vector<1x32xf32> to vector<8x32xf32>
    %22 = arith.mulf %15, %21 : vector<8x32xf32>
    %cst_8 = arith.constant dense<0.000000e+00> : vector<8xf32>
    %23 = vector.multi_reduction <add>, %22, %cst_8 [1] : vector<8x32xf32> to vector<8xf32>
    %24 = vector.shape_cast %23 : vector<8xf32> to vector<8x1xf32>
    %25 = vector.broadcast %24 : vector<8x1xf32> to vector<8x32xf32>
    %26 = arith.mulf %0, %25 : vector<8x32xf32>
    %27 = vector.shape_cast %19 : vector<32xf32> to vector<1x32xf32>
    %28 = vector.broadcast %27 : vector<1x32xf32> to vector<8x32xf32>
    %29 = arith.addf %26, %28 : vector<8x32xf32>
    %30 = arith.addf %29, %15 : vector<8x32xf32>
    %c2 = arith.constant 2 : index
    %c0_9 = arith.constant 0 : index
    %31 = vector.load %arg2[%c2, %c0_9] : memref<3x32xf32, #tpu.memory_space<vmem>>, vector<1x32xf32>
    %32 = vector.shape_cast %31 : vector<1x32xf32> to vector<32xf32>
    %c2_10 = arith.constant 2 : index
    %c0_11 = arith.constant 0 : index
    %33 = vector.load %arg3[%c2_10, %c0_11] : memref<3x32xf32, #tpu.memory_space<vmem>>, vector<1x32xf32>
    %34 = vector.shape_cast %33 : vector<1x32xf32> to vector<32xf32>
    %35 = vector.shape_cast %32 : vector<32xf32> to vector<1x32xf32>
    %36 = vector.broadcast %35 : vector<1x32xf32> to vector<8x32xf32>
    %37 = arith.mulf %30, %36 : vector<8x32xf32>
    %cst_12 = arith.constant dense<0.000000e+00> : vector<8xf32>
    %38 = vector.multi_reduction <add>, %37, %cst_12 [1] : vector<8x32xf32> to vector<8xf32>
    %39 = vector.shape_cast %38 : vector<8xf32> to vector<8x1xf32>
    %40 = vector.broadcast %39 : vector<8x1xf32> to vector<8x32xf32>
    %41 = arith.mulf %0, %40 : vector<8x32xf32>
    %42 = vector.shape_cast %34 : vector<32xf32> to vector<1x32xf32>
    %43 = vector.broadcast %42 : vector<1x32xf32> to vector<8x32xf32>
    %44 = arith.addf %41, %43 : vector<8x32xf32>
    %45 = arith.addf %44, %30 : vector<8x32xf32>
    %c0_13 = arith.constant 0 : index
    %c0_14 = arith.constant 0 : index
    %46 = vector.load %arg4[%c0_13, %c0_14] : memref<8x32xf32, #tpu.memory_space<vmem>>, vector<8x32xf32>
    tpu.vector_store %arg4[%c0_13, %c0_14], %45 {strides = array<i32>} : memref<8x32xf32, #tpu.memory_space<vmem>>, vector<8x32xf32>,
    return
  }
  func.func @transform_0(%arg0: i32) -> (i32, i32) {
    %c0_i32 = arith.constant 0 : i32
    %c0_i32_0 = arith.constant 0 : i32
    return %arg0, %c0_i32 : i32, i32
  }
  func.func @transform_1(%arg0: i32) -> (i32, i32) {
    %c0_i32 = arith.constant 0 : i32
    %c0_i32_0 = arith.constant 0 : i32
    %c0_i32_1 = arith.constant 0 : i32
    return %c0_i32, %c0_i32_0 : i32, i32
  }
  func.func @transform_2(%arg0: i32) -> (i32, i32) {
    %c0_i32 = arith.constant 0 : i32
    %c0_i32_0 = arith.constant 0 : i32
    %c0_i32_1 = arith.constant 0 : i32
    return %c0_i32, %c0_i32_0 : i32, i32
  }
  func.func @transform_3(%arg0: i32) -> (i32, i32) {
    %c0_i32 = arith.constant 0 : i32
    %c0_i32_0 = arith.constant 0 : i32
    return %arg0, %c0_i32 : i32, i32
  }
}

</mosaic_0001>

<bundles_post_ra>
// kernel: tpu_custom_call.1
= control target key start
LH: loop header
LB: loop body
LE: loop exit
PB: predicated region body
PF: predicated region fallthrough
CT: control target
= control target key end

     0   :  { %8 = vsyncpa [#allocation3], 0  ;;  %s262_s0 = inlined_call_operand.hbm [shape: f32[8,32], index: 0, kind: input, shape index: {}]   ;;  %s263_s1 = inlined_call_operand.hbm [shape: f32[3,32], index: 1, kind: input, shape index: {}]   ;;  %s264_s2 = inlined_call_operand.hbm [shape: f32[3,32], index: 2, kind: input, shape index: {}]   ;;  %s265_s3 = inlined_call_operand.hbm [shape: f32[8,32], index: 3, kind: output, shape index: {}]  }
   0x1   :  { %9 = vsyncpa [#allocation6], 0  ;;  %s27_s14 = sshll.u32 %s263_s1, 4  ;;  %s28_s14 = int_to_ptr.hbm [resolvable:$true] %s27_s14 }
   0x2   :  { %10 = vsyncpa [#allocation4], 0  ;;  %s222_s15 = smov [#allocation5]   ;;  %s16_s19 = sshll.u32 %s262_s0, 4  ;;  %s17_s19 = int_to_ptr.hbm [resolvable:$true] %s16_s19 }
   0x3   :  { %s29_s16 = sshll.u32 %s222_s15, 4  ;;  %s223_s20 = smov [#allocation2]   ;;  %s30_s16 = int_to_ptr.vmem [resolvable:$true] %s29_s16 }
   0x4   :  { %32 = dma.hbm_to_vmem [thread:$0]  %s28_s14, 64, %s30_s16, [#allocation6]  }
   0x5   :  { %s18_s21 = sshll.u32 %s223_s20, 4  ;;  %s38_s24 = sshll.u32 %s264_s2, 4  ;;  %s19_s21 = int_to_ptr.vmem [resolvable:$true] %s18_s21  ;;  %s39_s24 = int_to_ptr.hbm [resolvable:$true] %s38_s24 }
   0x6   :  { %21 = dma.hbm_to_vmem [thread:$0]  %s17_s19, 128, %s19_s21, [#allocation3]  }
   0x7   :  { %s224_s1 = smov [#allocation7]  }
   0x8   :  { %s40_s25 = sshll.u32 %s224_s1, 4  ;;  %s41_s25 = int_to_ptr.vmem [resolvable:$true] %s40_s25 }
   0x9   :  { %43 = dma.hbm_to_vmem [thread:$0]  %s39_s24, 64, %s41_s25, [#allocation6]  }
   0xa   :  { %216 = dma.done.wait [#allocation3], 128  }
   0xb   :  { %217 = vsyncadd [#allocation3], 4294967168 }
   0xc   :  { %218 = dma.done.wait [#allocation6], 128  }
   0xd   :  { %219 = vsyncadd [#allocation6], 4294967168  ;;  %v56_v0 = vld [vmem:[#allocation2] sm:$0xff]  ;;  %v114_v1 = vld [vmem:[#allocation5] ss:$0 sm:$0xff]  ;;  %vm61_vm0 = vcmask 261120  }
   0xe   :  { %v60_v2 = vmul.f32 %v114_v1, %v56_v0  ;;  %v115_v4 = vld [vmem:[#allocation7] ss:$0 sm:$0xff]  ;;  %v116_v8 = vld [vmem:[#allocation5 + $0x1] ss:$0 sm:$0xff]  ;;  %v117_v12 = vld [vmem:[#allocation7 + $0x1] ss:$0 sm:$0xff] }
   0xf   :  { %v118_v16 = vld [vmem:[#allocation5 + $0x2] ss:$0 sm:$0xff]  ;;  %v119_v20 = vld [vmem:[#allocation7 + $0x2] ss:$0 sm:$0xff]  ;;  %s225_s0 = smov [#allocation8]   ;;  %s99_s28 = sshll.u32 %s265_s3, 4  ;;  %s100_s28 = int_to_ptr.hbm [resolvable:$true] %s99_s28 }
  0x10   :  { %v62_v3 = vsel %vm61_vm0, %v60_v2, 0.0  ;;  %s97_s2 = sshll.u32 %s225_s0, 4  ;;  %s98_s2 = int_to_ptr.vmem [resolvable:$true] %s97_s2 }
  0x11   :  { %63 = vadd.xlane.f32.xlu0 %v62_v3 }
  0x84   :  { %v64_v5 = vpop.xlane.xlu0 %63 }
  0x85   :  { %v65_v6 = vmul.f32 %v64_v5, %v56_v0 }
  0x87   :  { %v67_v7 = vadd.f32 %v115_v4, %v65_v6 }
  0x89   :  { %v68_v9 = vadd.f32 %v67_v7, %v56_v0 }
  0x8b   :  { %v72_v10 = vmul.f32 %v116_v8, %v68_v9 }
  0x8d   :  { %v73_v11 = vsel %vm61_vm0, %v72_v10, 0.0 }
  0x8e   :  { %74 = vadd.xlane.f32.xlu0 %v73_v11 }
 0x101   :  { %v75_v13 = vpop.xlane.xlu0 %74 }
 0x102   :  { %v76_v14 = vmul.f32 %v75_v13, %v56_v0 }
 0x104   :  { %v78_v15 = vadd.f32 %v117_v12, %v76_v14 }
 0x106   :  { %v79_v17 = vadd.f32 %v78_v15, %v68_v9 }
 0x108   :  { %v83_v18 = vmul.f32 %v118_v16, %v79_v17 }
 0x10a   :  { %v84_v19 = vsel %vm61_vm0, %v83_v18, 0.0 }
 0x10b   :  { %85 = vadd.xlane.f32.xlu1 %v84_v19 }
 0x17e   :  { %v86_v21 = vpop.xlane.xlu1 %85 }
 0x17f   :  { %v87_v22 = vmul.f32 %v86_v21, %v56_v0 }
 0x181   :  { %v89_v23 = vadd.f32 %v119_v20, %v87_v22 }
 0x183   :  { %v90_v24 = vadd.f32 %v89_v23, %v79_v17 }
 0x185   :  { %91 = vst.msk [vmem:[#allocation8] sm:$0xff] %vm61_vm0, %v90_v24 }
 0x186   :  { %102 = dma.vmem_to_hbm [thread:$0]  %s98_s2, 128, %s100_s28, [#allocation4]  }
 0x187   :  { %220 = dma.done.wait [#allocation4], 128  }
 0x188   :  { %221 = vsyncadd [#allocation4], 4294967168 }
 0x189   :  { %107 = vsyncpa [#allocation3], 1 }
 0x18a   :  { %108 = vsyncpa [#allocation6], 1 }
 0x18b   :  { %109 = vsyncpa [#allocation4], 1 }

</bundles_post_ra>
